<compile_context>
chip_gen: v6e
topology: v6e:2x2x1
jax: 0.10.0
libtpu: 0.0.40
codegen_flags: <defaults>
</compile_context>

<pallas_src>
import functools

import jax
import jax.numpy as jnp
from jax import lax
from jax.experimental import pallas as pl
from jax.experimental.pallas import tpu as pltpu


_LANE = 128
_MAX_CHUNKS = 512            # hard cap on 128-lane chunks per spatial tile
_ROW_BLOCK_TARGET = 32       # keep the three (rb, 128) f32 accums in vregs
_UNROLL = 4                  # chunk-loop unroll inside the fori_loop body


def _dice_kernel(x_ref, t_ref, dice_ref, sti_ref, stt_ref, sii_ref, *,
                 n_chunks, chunk_w, tail_full, tail_rem, n_tiles, unroll):
    k = pl.program_id(1)

    @pl.when(k == 0)
    def _():
        sti_ref[...] = jnp.zeros_like(sti_ref)
        stt_ref[...] = jnp.zeros_like(stt_ref)
        sii_ref[...] = jnp.zeros_like(sii_ref)

    def accumulate(num_full, rem):
        """MAC `num_full` unmasked chunks plus an optional `rem`-lane tail."""
        sti = sti_ref[...]
        stt = stt_ref[...]
        sii = sii_ref[...]

        def mac(lo, s1, s2, s3, mask_rem=0):
            xs = x_ref[:, pl.ds(lo, chunk_w)].astype(jnp.float32)
            ts = t_ref[:, pl.ds(lo, chunk_w)].astype(jnp.float32)
            if mask_rem:
                lane = lax.broadcasted_iota(jnp.int32, (1, chunk_w), 1)
                valid = lane < mask_rem
                xs = jnp.where(valid, xs, 0.0)
                ts = jnp.where(valid, ts, 0.0)
            return s1 + ts * xs, s2 + ts * ts, s3 + xs * xs

        groups = num_full // unroll

        if groups > 0:
            def body(g, carry):
                s1, s2, s3 = carry
                base = pl.multiple_of(g * (unroll * chunk_w), chunk_w)
                for u in range(unroll):
                    s1, s2, s3 = mac(base + u * chunk_w, s1, s2, s3)
                return (s1, s2, s3)

            sti, stt, sii = lax.fori_loop(0, groups, body, (sti, stt, sii))

        # Static remainder chunks (< unroll of them).
        for c in range(groups * unroll, num_full):
            sti, stt, sii = mac(c * chunk_w, sti, stt, sii)

        # Masked ragged tail (only on the last spatial tile).
        if rem:
            sti, stt, sii = mac(num_full * chunk_w, sti, stt, sii,
                                mask_rem=rem)

        sti_ref[...] = sti
        stt_ref[...] = stt
        sii_ref[...] = sii

    uniform = (tail_full == n_chunks and tail_rem == 0)
    if uniform:
        accumulate(n_chunks, 0)
    elif n_tiles == 1:
        accumulate(tail_full, tail_rem)
    else:
        @pl.when(k < n_tiles - 1)
        def _():
            accumulate(n_chunks, 0)

        @pl.when(k == n_tiles - 1)
        def _():
            accumulate(tail_full, tail_rem)

    # Epilogue: fold denominators with one VPU add (two XLU reduces, not
    # three), then the dice formula, once per row block.
    @pl.when(k == n_tiles - 1)
    def _():
        eps = jnp.float32(0.0001)
        s_ti = jnp.sum(sti_ref[...], axis=1, keepdims=True)
        s_dn = jnp.sum(stt_ref[...] + sii_ref[...], axis=1, keepdims=True)
        dice_ref[...] = 1.0 - (2.0 * s_ti + eps) / (s_dn + eps)


def _round_down(x, m):
    return (x // m) * m


def _vmem_budgets():
    """(input double-buffer budget, vmem_limit_bytes) for this generation."""
    vmem_cap = 64 * 1024 * 1024          # conservative fallback (v7x per-TC)
    try:
        info = pltpu.get_tpu_info()
        cap = getattr(info, "vmem_capacity_bytes", None)
        if cap:
            vmem_cap = int(cap)
    except Exception:
        pass
    buffer_budget = min(int(0.55 * vmem_cap), 48 * 1024 * 1024)
    vmem_limit = min(int(0.75 * vmem_cap), 96 * 1024 * 1024)
    return buffer_budget, vmem_limit


def dice_loss_2d(inputs, target, *, skip_bg=False):
    """JAX/Pallas equivalent of DiceLoss2D.forward. inputs/target: (B,C,H,W)."""
    assert inputs.shape == target.shape
    B, C, H, W = inputs.shape
    BC = B * C
    HW = H * W

    x2d = inputs.reshape(BC, HW)
    t2d = target.reshape(BC, HW)

    itemsizes = (x2d.dtype.itemsize, t2d.dtype.itemsize)
    min_it, max_it = min(itemsizes), max(itemsizes)
    sublane = 8 if min_it >= 4 else (16 if min_it == 2 else 32)

    # Row (batch*class) block: a bounded sublane multiple (never rb == BC for
    # large BC).  cdiv coverage + dropped boundary-row writebacks handle
    # non-multiples without any padding.
    if BC >= sublane:
        rb = _round_down(min(_ROW_BLOCK_TARGET, BC), sublane)
        # Guarantee >= 2 steps on the "parallel" row axis when possible so a
        # 2-TC part (v7x) keeps both cores busy.  Near-free on 1-TC parts:
        # the spatial tile budget below scales back up with 1/rb.
        if pl.cdiv(BC, rb) < 2 and BC >= 2 * sublane:
            rb = max(sublane, _round_down(rb // 2, sublane))
    else:
        rb = BC                      # block dim == full array dim (legal)
    n_rb = pl.cdiv(BC, rb)

    buffer_budget, vmem_limit = _vmem_budgets()

    if HW >= _LANE:
        chunk_w = _LANE
        # 2 inputs x 2 pipeline buffers per 128-lane chunk of a (rb, thw) tile.
        per_chunk_bytes = 4 * rb * _LANE * max_it
        budget_chunks = max(1, buffer_budget // per_chunk_bytes)
        n_chunks = max(1, min(budget_chunks, _MAX_CHUNKS, HW // _LANE))
        thw = n_chunks * _LANE       # multiple of 128, <= HW
        n_tiles = pl.cdiv(HW, thw)
        rem_lanes = HW - (n_tiles - 1) * thw
        tail_full = rem_lanes // _LANE
        tail_rem = rem_lanes % _LANE
    else:
        # Tiny spatial extent: a single full-width (== array dim) tile.
        chunk_w = HW
        n_chunks, thw, n_tiles = 1, HW, 1
        tail_full, tail_rem = 1, 0

    kernel = functools.partial(
        _dice_kernel, n_chunks=n_chunks, chunk_w=chunk_w,
        tail_full=tail_full, tail_rem=tail_rem, n_tiles=n_tiles,
        unroll=_UNROLL)

    cost = pl.CostEstimate(
        flops=6 * BC * HW,
        transcendentals=0,
        bytes_accessed=BC * HW * (itemsizes[0] + itemsizes[1]) + BC * 4,
    )

    dices = pl.pallas_call(
        kernel,
        out_shape=jax.ShapeDtypeStruct((BC, 1), jnp.float32),
        grid_spec=pltpu.PrefetchScalarGridSpec(
            num_scalar_prefetch=0,
            grid=(n_rb, n_tiles),
            in_specs=[
                pl.BlockSpec((rb, thw), lambda r, k: (r, k)),
                pl.BlockSpec((rb, thw), lambda r, k: (r, k)),
            ],
            out_specs=pl.BlockSpec((rb, 1), lambda r, k: (r, 0)),
            scratch_shapes=[
                pltpu.VMEM((rb, chunk_w), jnp.float32),
                pltpu.VMEM((rb, chunk_w), jnp.float32),
                pltpu.VMEM((rb, chunk_w), jnp.float32),
            ],
        ),
        compiler_params=pltpu.CompilerParams(
            dimension_semantics=("parallel", "arbitrary"),
            vmem_limit_bytes=vmem_limit,
        ),
        cost_estimate=cost,
    )(x2d, t2d)

    # Tiny (B, C) finalize in the wrapper: background masking (skip_bg) and the
    # class/batch mean.  No full-tensor slice copies on the skip_bg path.
    dices = dices.reshape(B, C)
    if skip_bg:
        dices = dices[:, 1:]
        num_classes = C - 1
    else:
        num_classes = C
    return jnp.mean(jnp.sum(dices, axis=1) / num_classes)


def dice_loss_2d_ref(inputs, target, *, skip_bg=False):
    """Pure-JAX reference mirroring the PyTorch forward."""
    eps = 0.0001
    if skip_bg:
        inputs = inputs[:, 1:]
        target = target[:, 1:]
    num_classes = inputs.shape[1]
    numerators = 2 * jnp.sum(target * inputs, axis=(2, 3)) + eps
    denominators = (
        jnp.sum(target * target, axis=(2, 3))
        + jnp.sum(inputs * inputs, axis=(2, 3))
        + eps
    )
    dices = 1 - numerators / denominators
    avg_dices = jnp.sum(dices, axis=1) / num_classes
    return jnp.mean(avg_dices)


def _make_inputs(key, B, C, H, W):
    k1, k2 = jax.random.split(key)
    logits = jax.random.normal(k1, (B, C, H, W), dtype=jnp.float32)
    inputs = jax.nn.softmax(logits, axis=1)
    labels = jax.random.randint(k2, (B, H, W), 0, C)
    target = jax.nn.one_hot(labels, C, axis=1, dtype=jnp.float32)
    return inputs, target


if __name__ == "__main__":
    key = jax.random.PRNGKey(0)
    keys = jax.random.split(key, 4)

    cases = [
        (2, 4, 16, 16),   # lane-aligned spatial extent, single tile
        (2, 3, 10, 12),   # HW < 128 (full-dim spatial block path)
        (2, 5, 18, 20),   # HW = 360: ragged spatial tail + ragged row block
        (8, 4, 13, 17),   # HW = 221: multi-tile ragged tail, n_rb >= 2
    ]

    for k_i, (B, C, H, W) in zip(keys, cases):
        inputs, target = _make_inputs(k_i, B, C, H, W)
        for skip_bg in (False, True):
            out = jax.block_until_ready(
                dice_loss_2d(inputs, target, skip_bg=skip_bg))
            ref = jax.block_until_ready(
                dice_loss_2d_ref(inputs, target, skip_bg=skip_bg))
            assert jnp.allclose(out, ref, atol=1e-5, rtol=1e-5), (
                (B, C, H, W), skip_bg, out, ref)

    print("KERNEL_OK")
</pallas_src>

<mosaic_0001>
module attributes {stable_mosaic.version = 11 : i64} {
  func.func @_dice_kernel(%arg0: i32, %arg1: i32, %arg2: memref<8x256xf32, #tpu.memory_space<vmem>>, %arg3: memref<8x256xf32, #tpu.memory_space<vmem>>, %arg4: memref<8x1xf32, #tpu.memory_space<vmem>>, %arg5: memref<8x128xf32, #tpu.memory_space<vmem>>, %arg6: memref<8x128xf32, #tpu.memory_space<vmem>>, %arg7: memref<8x128xf32, #tpu.memory_space<vmem>>) attributes {dimension_semantics = [#tpu.dimension_semantics<parallel>, #tpu.dimension_semantics<arbitrary>], iteration_bounds = array<i64: 1, 1>, scalar_prefetch = 0 : i64, scratch_operands = 3 : i64, tpu.core_type = #tpu.core_type<tc>, window_params = [{transform_indices = @transform_0, window_bounds = array<i64: 8, 256>}, {transform_indices = @transform_1, window_bounds = array<i64: 8, 256>}, {transform_indices = @transform_2, window_bounds = array<i64: 8, 1>}]} {
    %c0_i32 = arith.constant 0 : i32
    %0 = arith.cmpi eq, %arg1, %c0_i32 : i32
    %1 = arith.extui %0 : i1 to i32
    %c0_i32_0 = arith.constant 0 : i32
    %2 = arith.cmpi ne, %1, %c0_i32_0 : i32
    scf.if %2 {
      %cst = arith.constant 0.000000e+00 : f32
      %28 = vector.broadcast %cst : f32 to vector<8x128xf32>
      %c0_21 = arith.constant 0 : index
      %c0_22 = arith.constant 0 : index
      %29 = vector.load %arg5[%c0_21, %c0_22] : memref<8x128xf32, #tpu.memory_space<vmem>>, vector<8x128xf32>
      tpu.vector_store %arg5[%c0_21, %c0_22], %28 {strides = array<i32>} : memref<8x128xf32, #tpu.memory_space<vmem>>, vector<8x128xf32>,
      %cst_23 = arith.constant 0.000000e+00 : f32
      %30 = vector.broadcast %cst_23 : f32 to vector<8x128xf32>
      %c0_24 = arith.constant 0 : index
      %c0_25 = arith.constant 0 : index
      %31 = vector.load %arg6[%c0_24, %c0_25] : memref<8x128xf32, #tpu.memory_space<vmem>>, vector<8x128xf32>
      tpu.vector_store %arg6[%c0_24, %c0_25], %30 {strides = array<i32>} : memref<8x128xf32, #tpu.memory_space<vmem>>, vector<8x128xf32>,
      %cst_26 = arith.constant 0.000000e+00 : f32
      %32 = vector.broadcast %cst_26 : f32 to vector<8x128xf32>
      %c0_27 = arith.constant 0 : index
      %c0_28 = arith.constant 0 : index
      %33 = vector.load %arg7[%c0_27, %c0_28] : memref<8x128xf32, #tpu.memory_space<vmem>>, vector<8x128xf32>
      tpu.vector_store %arg7[%c0_27, %c0_28], %32 {strides = array<i32>} : memref<8x128xf32, #tpu.memory_space<vmem>>, vector<8x128xf32>,
    } else {
    }
    %c0 = arith.constant 0 : index
    %c0_1 = arith.constant 0 : index
    %3 = vector.load %arg5[%c0, %c0_1] : memref<8x128xf32, #tpu.memory_space<vmem>>, vector<8x128xf32>
    %c0_2 = arith.constant 0 : index
    %c0_3 = arith.constant 0 : index
    %4 = vector.load %arg6[%c0_2, %c0_3] : memref<8x128xf32, #tpu.memory_space<vmem>>, vector<8x128xf32>
    %c0_4 = arith.constant 0 : index
    %c0_5 = arith.constant 0 : index
    %5 = vector.load %arg7[%c0_4, %c0_5] : memref<8x128xf32, #tpu.memory_space<vmem>>, vector<8x128xf32>
    %c0_6 = arith.constant 0 : index
    %c0_7 = arith.constant 0 : index
    %6 = vector.load %arg2[%c0_6, %c0_7] : memref<8x256xf32, #tpu.memory_space<vmem>>, vector<8x128xf32>
    %c0_8 = arith.constant 0 : index
    %c0_9 = arith.constant 0 : index
    %7 = vector.load %arg3[%c0_8, %c0_9] : memref<8x256xf32, #tpu.memory_space<vmem>>, vector<8x128xf32>
    %8 = arith.mulf %7, %6 : vector<8x128xf32>
    %9 = arith.addf %3, %8 : vector<8x128xf32>
    %10 = arith.mulf %7, %7 : vector<8x128xf32>
    %11 = arith.addf %4, %10 : vector<8x128xf32>
    %12 = arith.mulf %6, %6 : vector<8x128xf32>
    %13 = arith.addf %5, %12 : vector<8x128xf32>
    %c0_10 = arith.constant 0 : index
    %c128 = arith.constant 128 : index
    %14 = vector.load %arg2[%c0_10, %c128] : memref<8x256xf32, #tpu.memory_space<vmem>>, vector<8x128xf32>
    %c0_11 = arith.constant 0 : index
    %c128_12 = arith.constant 128 : index
    %15 = vector.load %arg3[%c0_11, %c128_12] : memref<8x256xf32, #tpu.memory_space<vmem>>, vector<8x128xf32>
    %16 = arith.mulf %15, %14 : vector<8x128xf32>
    %17 = arith.addf %9, %16 : vector<8x128xf32>
    %18 = arith.mulf %15, %15 : vector<8x128xf32>
    %19 = arith.addf %11, %18 : vector<8x128xf32>
    %20 = arith.mulf %14, %14 : vector<8x128xf32>
    %21 = arith.addf %13, %20 : vector<8x128xf32>
    %c0_13 = arith.constant 0 : index
    %c0_14 = arith.constant 0 : index
    %22 = vector.load %arg5[%c0_13, %c0_14] : memref<8x128xf32, #tpu.memory_space<vmem>>, vector<8x128xf32>
    tpu.vector_store %arg5[%c0_13, %c0_14], %17 {strides = array<i32>} : memref<8x128xf32, #tpu.memory_space<vmem>>, vector<8x128xf32>,
    %c0_15 = arith.constant 0 : index
    %c0_16 = arith.constant 0 : index
    %23 = vector.load %arg6[%c0_15, %c0_16] : memref<8x128xf32, #tpu.memory_space<vmem>>, vector<8x128xf32>
    tpu.vector_store %arg6[%c0_15, %c0_16], %19 {strides = array<i32>} : memref<8x128xf32, #tpu.memory_space<vmem>>, vector<8x128xf32>,
    %c0_17 = arith.constant 0 : index
    %c0_18 = arith.constant 0 : index
    %24 = vector.load %arg7[%c0_17, %c0_18] : memref<8x128xf32, #tpu.memory_space<vmem>>, vector<8x128xf32>
    tpu.vector_store %arg7[%c0_17, %c0_18], %21 {strides = array<i32>} : memref<8x128xf32, #tpu.memory_space<vmem>>, vector<8x128xf32>,
    %c0_i32_19 = arith.constant 0 : i32
    %25 = arith.cmpi eq, %arg1, %c0_i32_19 : i32
    %26 = arith.extui %25 : i1 to i32
    %c0_i32_20 = arith.constant 0 : i32
    %27 = arith.cmpi ne, %26, %c0_i32_20 : i32
    scf.if %27 {
      %c0_21 = arith.constant 0 : index
      %c0_22 = arith.constant 0 : index
      %28 = vector.load %arg5[%c0_21, %c0_22] : memref<8x128xf32, #tpu.memory_space<vmem>>, vector<8x128xf32>
      %cst = arith.constant dense<0.000000e+00> : vector<8xf32>
      %29 = vector.multi_reduction <add>, %28, %cst [1] : vector<8x128xf32> to vector<8xf32>
      %30 = vector.shape_cast %29 : vector<8xf32> to vector<8x1xf32>
      %c0_23 = arith.constant 0 : index
      %c0_24 = arith.constant 0 : index
      %31 = vector.load %arg6[%c0_23, %c0_24] : memref<8x128xf32, #tpu.memory_space<vmem>>, vector<8x128xf32>
      %c0_25 = arith.constant 0 : index
      %c0_26 = arith.constant 0 : index
      %32 = vector.load %arg7[%c0_25, %c0_26] : memref<8x128xf32, #tpu.memory_space<vmem>>, vector<8x128xf32>
      %33 = arith.addf %31, %32 : vector<8x128xf32>
      %cst_27 = arith.constant dense<0.000000e+00> : vector<8xf32>
      %34 = vector.multi_reduction <add>, %33, %cst_27 [1] : vector<8x128xf32> to vector<8xf32>
      %35 = vector.shape_cast %34 : vector<8xf32> to vector<8x1xf32>
      %cst_28 = arith.constant 2.000000e+00 : f32
      %36 = vector.broadcast %cst_28 : f32 to vector<8x1xf32>
      %37 = arith.mulf %36, %30 : vector<8x1xf32>
      %cst_29 = arith.constant 9.99999974E-5 : f32
      %38 = vector.broadcast %cst_29 : f32 to vector<8x1xf32>
      %39 = arith.addf %37, %38 : vector<8x1xf32>
      %cst_30 = arith.constant 9.99999974E-5 : f32
      %40 = vector.broadcast %cst_30 : f32 to vector<8x1xf32>
      %41 = arith.addf %35, %40 : vector<8x1xf32>
      %42 = arith.divf %39, %41 : vector<8x1xf32>
      %cst_31 = arith.constant 1.000000e+00 : f32
      %43 = vector.broadcast %cst_31 : f32 to vector<8x1xf32>
      %44 = arith.subf %43, %42 : vector<8x1xf32>
      %c0_32 = arith.constant 0 : index
      %c0_33 = arith.constant 0 : index
      %45 = vector.load %arg4[%c0_32, %c0_33] : memref<8x1xf32, #tpu.memory_space<vmem>>, vector<8x1xf32>
      tpu.vector_store %arg4[%c0_32, %c0_33], %44 {strides = array<i32>} : memref<8x1xf32, #tpu.memory_space<vmem>>, vector<8x1xf32>,
    } else {
    }
    return
  }
  func.func @transform_0(%arg0: i32, %arg1: i32) -> (i32, i32) {
    %c0_i32 = arith.constant 0 : i32
    return %arg0, %arg1 : i32, i32
  }
  func.func @transform_1(%arg0: i32, %arg1: i32) -> (i32, i32) {
    %c0_i32 = arith.constant 0 : i32
    return %arg0, %arg1 : i32, i32
  }
  func.func @transform_2(%arg0: i32, %arg1: i32) -> (i32, i32) {
    %c0_i32 = arith.constant 0 : i32
    %c0_i32_0 = arith.constant 0 : i32
    return %arg0, %c0_i32 : i32, i32
  }
}

</mosaic_0001>

<bundles_post_ra>
// kernel: tpu_custom_call.1
= control target key start
LH: loop header
LB: loop body
LE: loop exit
PB: predicated region body
PF: predicated region fallthrough
CT: control target
= control target key end

     0   :  { %7 = vsyncpa [#allocation6], 0  ;;  %s163_s0 = inlined_call_operand.hbm [shape: f32[8,256], index: 0, kind: input, shape index: {}]   ;;  %s164_s1 = inlined_call_operand.hbm [shape: f32[8,256], index: 1, kind: input, shape index: {}]   ;;  %s165_s2 = inlined_call_operand.vmem [shape: f32[8,1], index: 2, kind: output, shape index: {}]  }
   0x1   :  { %8 = vsyncpa [#allocation8], 0  ;;  %s137_s9 = smov [#allocation5]   ;;  %s138_s11 = smov [#allocation7]  }
   0x2   :  { %s15_s10 = sshll.u32 %s137_s9, 4  ;;  %s25_s12 = sshll.u32 %s138_s11, 4  ;;  %s16_s10 = int_to_ptr.vmem [resolvable:$true] %s15_s10  ;;  %s26_s12 = int_to_ptr.vmem [resolvable:$true] %s25_s12 }
   0x3   :  { %s101_s13 = scalar_lea.vmem %s16_s10, 256  ;;  %p106_p1 = scmp.lt.s32.totalorder %s16_s10, %s16_s10 }
   0x4   :  { %p102_p0 = scmp.ne.s32.totalorder %s16_s10, %s101_s13  ;;  %p107_p2 = scmp.lt.s32.totalorder %s101_s13, %s101_s13 }
   0x6   :  { %p108_p3 = por %p107_p2, %p106_p1 }
   0x8   :  { %p109_p4 = pnand %p108_p3, %p102_p0 }
   0xa   :  { %112 = shalt.err (!%p109_p4)
}
   0xb   :  { %18 = dma.hbm_to_vmem [thread:$0]  %s163_s0, 256, %s16_s10, [#allocation6]  }
   0xc   :  { %s121_s16 = scalar_lea.vmem %s26_s12, 256  ;;  %p126_p6 = scmp.lt.s32.totalorder %s26_s12, %s26_s12 }
   0xd   :  { %p122_p5 = scmp.ne.s32.totalorder %s26_s12, %s121_s16  ;;  %p127_p7 = scmp.lt.s32.totalorder %s121_s16, %s121_s16 }
   0xf   :  { %p128_p8 = por %p127_p7, %p126_p6 }
  0x11   :  { %p129_p9 = pnand %p128_p8, %p122_p5 }
  0x13   :  { %132 = shalt.err (!%p129_p9)
}
  0x14   :  { %28 = dma.hbm_to_vmem [thread:$0]  %s164_s1, 256, %s26_s12, [#allocation8]  }
  0x15   :  { %133 = dma.done.wait [#allocation6], 256  }
  0x16   :  { %134 = vsyncadd [#allocation6], 4294967040 }
  0x17   :  { %135 = dma.done.wait [#allocation8], 256  }
  0x18   :  { %136 = vsyncadd [#allocation8], 4294967040  ;;  %v45_v0 = vld [vmem:[#allocation5] sm:$0xff]  ;;  %v46_v1 = vld [vmem:[#allocation7] sm:$0xff]  ;;  %vm81_vm0 = vcmask 7168  }
  0x19   :  { %v53_v2 = vld [vmem:[#allocation5 + $0x8] sm:$0xff]  ;;  %v49_v3 = vmul.f32 %v46_v1, %v46_v1  ;;  %v51_v4 = vmul.f32 %v45_v0, %v45_v0  ;;  %v54_v5 = vld [vmem:[#allocation7 + $0x8] sm:$0xff]  ;;  %v47_v10 = vmul.f32 %v46_v1, %v45_v0 }
  0x1a   :  { %v59_v6 = vmul.f32 %v53_v2, %v53_v2  ;;  %v57_v7 = vmul.f32 %v54_v5, %v54_v5  ;;  %v55_v11 = vmul.f32 %v54_v5, %v53_v2 }
  0x1c   :  { %v60_v8 = vadd.f32 %v59_v6, %v51_v4  ;;  %v58_v9 = vadd.f32 %v57_v7, %v49_v3  ;;  %v56_v13 = vadd.f32 %v55_v11, %v47_v10 }
  0x1e   :  { %v72_v12 = vadd.f32 %v60_v8, %v58_v9 }
  0x20   :  { %73 = vadd.xlane.f32.xlu0 %v72_v12 }
  0x24   :  { %68 = vadd.xlane.f32.xlu0 %v56_v13 }
  0xa9   :  { %v74_v14 = vpop.xlane.xlu0 %73 }
  0xaa   :  { %v77_v15 = vadd.f32 0.0001, %v74_v14 }
  0xac   :  { %91 = vrcp.f32 %v77_v15 }
  0xad   :  { %v69_v16 = vpop.xlane.xlu0 %68 }
  0xae   :  { %v75_v17 = vmul.f32 2.0, %v69_v16 }
  0xb0   :  { %v76_v18 = vadd.f32 0.0001, %v75_v17 }
  0xb9   :  { %v92_v19 = vpop.eup %91 }
  0xba   :  { %v79_v20 = vmul.f32 %v92_v19, %v76_v18 }
  0xbc   :  { %v80_v21 = vsub.f32 1.0, %v79_v20 }
  0xbe   :  { %82 = vst.msk [vmem:[%s165_s2] sm:$0xff] %vm81_vm0, %v80_v21 }
  0xbf   :  { %87 = vsyncpa [#allocation6], 1 }
  0xc0   :  { %88 = vsyncpa [#allocation8], 1 }

</bundles_post_ra>
